<compile_context>
chip_gen: v7x
topology: tpu7x:2x2x1
jax: 0.10.0
libtpu: 0.0.40
codegen_flags: <defaults>
</compile_context>

<pallas_src>
import numpy as np
import jax
import jax.numpy as jnp
from jax.experimental import pallas as pl
from jax.experimental.pallas import tpu as pltpu


# -----------------------------------------------------------------------------
# Fused kernel: out = relu(x @ W1 + b1) @ W2 + b2
#   bf16 operands on the MXU, f32 accumulation, f32 bias/ReLU on the VPU.
# -----------------------------------------------------------------------------
def _critic_kernel(x_ref, w1_ref, b1_ref, w2_ref, b2_ref, o_ref):
    x = x_ref[...].astype(jnp.bfloat16)                       # (tb, D) bf16
    h = jnp.dot(x, w1_ref[...],
                preferred_element_type=jnp.float32)           # (tb, D) f32, MXU
    h = jnp.maximum(h + b1_ref[...], 0.0)                     # bias + ReLU, f32 VPU
    y = jnp.dot(h.astype(jnp.bfloat16), w2_ref[...],
                preferred_element_type=jnp.float32)           # (tb, 1) f32, MXU
    o_ref[...] = (y + b2_ref[0, 0]).astype(o_ref.dtype)       # b2 scalar from SMEM


_TB_MAX = 1024                       # big row tiles: ~86% of roofline in tile sweeps
_VMEM_LIMIT = 32 * 1024 * 1024       # raise v5e's 16 MiB scoped default; safe on v7x


def _cost(B, D):
    return pl.CostEstimate(
        flops=2 * B * D * (D + 1),
        transcendentals=0,
        bytes_accessed=B * D * 4 + D * D * 2 + D * 6 + B * 4)


def _critic_pallas(x, w1, b1, w2, b2):
    B, D = x.shape
    out_shape = jax.ShapeDtypeStruct((B, 1), jnp.float32)
    vmem = pltpu.MemorySpace.VMEM
    smem = pltpu.MemorySpace.SMEM

    if B <= 512:
        # Whole problem fits a single step: no grid machinery, everything VMEM-resident.
        return pl.pallas_call(
            _critic_kernel,
            in_specs=[pl.BlockSpec(memory_space=vmem),    # x
                      pl.BlockSpec(memory_space=vmem),    # W1
                      pl.BlockSpec(memory_space=vmem),    # b1
                      pl.BlockSpec(memory_space=vmem),    # W2
                      pl.BlockSpec(memory_space=smem)],   # b2 scalar
            out_specs=pl.BlockSpec(memory_space=vmem),
            out_shape=out_shape,
            cost_estimate=_cost(B, D),
            compiler_params=pltpu.CompilerParams(vmem_limit_bytes=_VMEM_LIMIT),
        )(x, w1, b1, w2, b2)

    # Tiled path: large row tiles (amortize per-step overhead) but >= 2 tiles so
    # v7x's two TensorCores can split the "parallel" batch axis.  The ragged last
    # tile (B % tb != 0) is handled by Pallas masked reads/writes — no full-array
    # jnp.pad copy through HBM.
    tb = min(_TB_MAX, -(-B // 2))            # ceil(B/2), capped
    tb = ((tb + 7) // 8) * 8                 # sublane-aligned block rows
    grid_b = pl.cdiv(B, tb)

    return pl.pallas_call(
        _critic_kernel,
        grid=(grid_b,),
        in_specs=[pl.BlockSpec((tb, D), lambda i: (i, 0)),      # x rows streamed
                  pl.BlockSpec((D, D), lambda i: (0, 0)),       # W1 resident (bf16)
                  pl.BlockSpec((1, D), lambda i: (0, 0)),       # b1 resident
                  pl.BlockSpec((D, 1), lambda i: (0, 0)),       # W2 resident (bf16)
                  pl.BlockSpec(memory_space=smem)],             # b2 scalar in SMEM
        out_specs=pl.BlockSpec((tb, 1), lambda i: (i, 0)),
        out_shape=out_shape,
        cost_estimate=_cost(B, D),
        compiler_params=pltpu.CompilerParams(
            dimension_semantics=("parallel",),   # rows independent -> megacore split
            vmem_limit_bytes=_VMEM_LIMIT),
    )(x, w1, b1, w2, b2)


# -----------------------------------------------------------------------------
# Parameters + wrapper mirroring Critic.forward (eval mode).
# -----------------------------------------------------------------------------
def init_critic_params(key, in_dim=512):
    k1, k2, k3, k4 = jax.random.split(key, 4)
    bound = 1.0 / np.sqrt(in_dim)
    return {
        # torch nn.Linear keeps (out, in); stored transposed (in, out) here.
        # Weights in bf16 (MXU operands), biases in f32.
        "w1": jax.random.uniform(k1, (in_dim, in_dim), jnp.float32,
                                 -bound, bound).astype(jnp.bfloat16),
        "b1": jax.random.uniform(k2, (1, in_dim), jnp.float32, -bound, bound),
        "w2": jax.random.uniform(k3, (in_dim, 1), jnp.float32,
                                 -bound, bound).astype(jnp.bfloat16),
        "b2": jax.random.uniform(k4, (1, 1), jnp.float32, -bound, bound),
    }


def critic_forward(params, state):
    """value = state2value(state).squeeze()  (dropout = identity in eval mode)."""
    D = state.shape[-1]
    lead = state.shape[:-1]
    x = state.reshape((-1, D)).astype(jnp.float32)
    out = _critic_pallas(x, params["w1"], params["b1"],
                         params["w2"], params["b2"])            # (B, 1)
    y = out.reshape(lead + (1,))
    return jnp.squeeze(y)   # matches torch .squeeze(): (B,) for B>1, scalar for B==1


# -----------------------------------------------------------------------------
# Pure-JAX reference (f32 math on the stored params) for numeric sanity check.
# -----------------------------------------------------------------------------
def _reference_forward(params, state):
    w1 = params["w1"].astype(jnp.float32)
    w2 = params["w2"].astype(jnp.float32)
    h = jnp.maximum(state @ w1 + params["b1"], 0.0)
    return jnp.squeeze(h @ w2 + params["b2"])


if __name__ == "__main__":
    IN_DIM = 512   # module default in_dim

    key = jax.random.PRNGKey(0)
    kp, ks, ks2 = jax.random.split(key, 3)
    params = init_critic_params(kp, IN_DIM)

    # Small batch -> grid-less single-step path.
    B = 2
    state = jax.random.normal(ks, (B, IN_DIM), jnp.float32)
    value = critic_forward(params, state)
    jax.block_until_ready(value)
    ref = _reference_forward(params, state)
    assert value.shape == (B,), value.shape
    np.testing.assert_allclose(np.asarray(value), np.asarray(ref),
                               rtol=5e-2, atol=5e-2)

    # 1-D input path (torch squeeze -> scalar).
    v1 = critic_forward(params, state[0])
    jax.block_until_ready(v1)
    assert v1.shape == ()
    np.testing.assert_allclose(np.asarray(v1), np.asarray(ref[0]),
                               rtol=5e-2, atol=5e-2)

    # Larger ragged batch -> tiled path (2 parallel tiles, masked tail, no jnp.pad).
    B2 = 1100
    state2 = jax.random.normal(ks2, (B2, IN_DIM), jnp.float32)
    v2 = critic_forward(params, state2)
    jax.block_until_ready(v2)
    ref2 = _reference_forward(params, state2)
    assert v2.shape == (B2,), v2.shape
    np.testing.assert_allclose(np.asarray(v2), np.asarray(ref2),
                               rtol=5e-2, atol=5e-2)

    print("KERNEL_OK")
</pallas_src>

<mosaic_0001>
module attributes {stable_mosaic.version = 11 : i64} {
  func.func @_critic_kernel(%arg0: memref<2x512xf32, #tpu.memory_space<vmem>>, %arg1: memref<512x512xbf16, #tpu.memory_space<vmem>>, %arg2: memref<1x512xf32, #tpu.memory_space<vmem>>, %arg3: memref<512x1xbf16, #tpu.memory_space<vmem>>, %arg4: memref<1x1xf32, #tpu.memory_space<smem>>, %arg5: memref<2x1xf32, #tpu.memory_space<vmem>>) attributes {dimension_semantics = [], scalar_prefetch = 0 : i64, scratch_operands = 0 : i64, tpu.core_type = #tpu.core_type<tc>} {
    %c0 = arith.constant 0 : index
    %c0_0 = arith.constant 0 : index
    %0 = vector.load %arg0[%c0, %c0_0] : memref<2x512xf32, #tpu.memory_space<vmem>>, vector<2x512xf32>
    %1 = arith.truncf %0 : vector<2x512xf32> to vector<2x512xbf16>
    %c0_1 = arith.constant 0 : index
    %c0_2 = arith.constant 0 : index
    %2 = vector.load %arg1[%c0_1, %c0_2] : memref<512x512xbf16, #tpu.memory_space<vmem>>, vector<512x512xbf16>
    %cst = arith.constant dense<0.000000e+00> : vector<2x512xf32>
    %3 = tpu.matmul %1, %2, %cst {dimension_numbers = #tpu.dot_dimension_numbers<[1], [0], [0], [1], [0, 0, 1, 1], [], []>} : vector<2x512xbf16>, vector<512x512xbf16>, vector<2x512xf32> -> vector<2x512xf32>
    %c0_3 = arith.constant 0 : index
    %c0_4 = arith.constant 0 : index
    %4 = vector.load %arg2[%c0_3, %c0_4] : memref<1x512xf32, #tpu.memory_space<vmem>>, vector<1x512xf32>
    %5 = vector.broadcast %4 : vector<1x512xf32> to vector<2x512xf32>
    %6 = arith.addf %3, %5 : vector<2x512xf32>
    %cst_5 = arith.constant 0.000000e+00 : f32
    %7 = vector.broadcast %cst_5 : f32 to vector<2x512xf32>
    %8 = arith.maximumf %6, %7 : vector<2x512xf32>
    %9 = arith.truncf %8 : vector<2x512xf32> to vector<2x512xbf16>
    %c0_6 = arith.constant 0 : index
    %c0_7 = arith.constant 0 : index
    %10 = vector.load %arg3[%c0_6, %c0_7] : memref<512x1xbf16, #tpu.memory_space<vmem>>, vector<512x1xbf16>
    %cst_8 = arith.constant dense<0.000000e+00> : vector<2x1xf32>
    %11 = tpu.matmul %9, %10, %cst_8 {dimension_numbers = #tpu.dot_dimension_numbers<[1], [0], [0], [1], [0, 0, 1, 1], [], []>} : vector<2x512xbf16>, vector<512x1xbf16>, vector<2x1xf32> -> vector<2x1xf32>
    %c0_9 = arith.constant 0 : index
    %c0_10 = arith.constant 0 : index
    %12 = memref.load %arg4[%c0_9, %c0_10] : memref<1x1xf32, #tpu.memory_space<smem>>
    %13 = vector.broadcast %12 : f32 to vector<2x1xf32>
    %14 = arith.addf %11, %13 : vector<2x1xf32>
    %c0_11 = arith.constant 0 : index
    %c0_12 = arith.constant 0 : index
    %15 = vector.load %arg5[%c0_11, %c0_12] : memref<2x1xf32, #tpu.memory_space<vmem>>, vector<2x1xf32>
    tpu.vector_store %arg5[%c0_11, %c0_12], %14 {strides = array<i32>} : memref<2x1xf32, #tpu.memory_space<vmem>>, vector<2x1xf32>,
    return
  }
}

</mosaic_0001>

<bundles_post_ra>
// kernel: tpu_custom_call.1
= control target key start
LH: loop header
LB: loop body
LE: loop exit
PB: predicated region body
PF: predicated region fallthrough
CT: control target
= control target key end

     0   :  { %11 = vsyncpa [#allocation4], 0  ;;  %s1839_s18 = smov [#allocation3]   ;;  %s2006_s0 = inlined_call_operand.vmem [shape: f32[2,512], index: 0, kind: input, shape index: {}]   ;;  %s2007_s1 = inlined_call_operand.hbm [shape: bf16[512,512], index: 1, kind: input, shape index: {}]   ;;  %s2008_s2 = inlined_call_operand.vmem [shape: f32[1,512], index: 2, kind: input, shape index: {}]   ;;  %s2009_s3 = inlined_call_operand.vmem [shape: bf16[512,1], index: 3, kind: input, shape index: {}]   ;;  %s2010_s4 = inlined_call_operand.<no memory space> [shape: f32[1,1], index: 4, kind: input, shape index: {}]   ;;  %s2011_s5 = inlined_call_operand.vmem [shape: f32[2,1], index: 5, kind: output, shape index: {}]  }
   0x1   :  { %s19_s19 = sshll.u32 %s1839_s18, 4  ;;  %s1815_s22 = scalar_lea.hbm %s2007_s1, 16384  ;;  %s20_s19 = int_to_ptr.vmem [resolvable:$true] %s19_s19 }
   0x2   :  { %p1816_p0 = scmp.ne.s32.totalorder %s2007_s1, %s1815_s22  ;;  %p1819_p1 = scmp.lt.u32.totalorder %s1815_s22, %s2007_s1 }
   0x4   :  { %p1821_p2 = pnand %p1819_p1, %p1816_p0 }
   0x6   :  { %1824 = shalt.err (!%p1821_p2)
}
   0x7   :  { %s1825_s27 = scalar_lea.vmem %s20_s19, 16384  ;;  %p1830_p4 = scmp.lt.s32.totalorder %s20_s19, %s20_s19 }
   0x8   :  { %p1826_p3 = scmp.ne.s32.totalorder %s20_s19, %s1825_s27  ;;  %p1831_p5 = scmp.lt.s32.totalorder %s1825_s27, %s1825_s27 }
   0xa   :  { %p1832_p6 = por %p1831_p5, %p1830_p4 }
   0xc   :  { %p1833_p7 = pnand %p1832_p6, %p1826_p3 }
   0xe   :  { %1836 = shalt.err (!%p1833_p7)
}
   0xf   :  { %s1840_s28 = smov 256   ;;  %s1841_s29 = smov 16  }
  0x10   :  { %25 = dma.hbm_to_vmem [thread:$0]  %s2007_s1, 16384, %s20_s19, [#allocation4], %s1840_s28, %s1840_s28, %s1841_s29  }
  0x11   :  { %1837 = dma.done.wait [#allocation4], 16384  }
  0x12   :  { %1838 = vsyncadd [#allocation4], 4294950912  ;;  %v1590_v0 = vld [vmem:[#allocation3 + $0x4] ss:$16 sps:$4 sm:$0xff]   ;;  %v1592_v1 = vld [vmem:[#allocation3 + $0xc] ss:$16 sps:$4 sm:$0xff]   ;;  %v42_v38 = vlaneseq }
  0x13   :  { %853 = vmatprep.subr.bf16.mxu0 %v1590_v0  ;;  %v1594_v2 = vld [vmem:[#allocation3] ss:$16 sps:$4 sm:$0xff]   ;;  %v1595_v3 = vld [vmem:[#allocation3 + $0x8] ss:$16 sps:$4 sm:$0xff]   ;;  %935 = vmatprep.subr.bf16.mxu1 %v1592_v1  ;;  %v1596_v4 = vld [vmem:[#allocation3 + $0x24] ss:$16 sps:$4 sm:$0xff]  }
  0x14   :  { %854 = vmatpush1.bf16.msra.mxu0 %v1594_v2  ;;  %936 = vmatpush1.bf16.msra.mxu1 %v1595_v3  ;;  %v1598_v5 = vld [vmem:[#allocation3 + $0x2c] ss:$16 sps:$4 sm:$0xff]   ;;  %v1600_v6 = vld [vmem:[#allocation3 + $0x20] ss:$16 sps:$4 sm:$0xff]   ;;  %v1601_v7 = vld [vmem:[#allocation3 + $0x28] ss:$16 sps:$4 sm:$0xff]  }
  0x15   :  { %855 = vmatprep.subr.bf16.mxu0 %v1596_v4  ;;  %937 = vmatprep.subr.bf16.mxu1 %v1598_v5  ;;  %v1602_v8 = vld [vmem:[#allocation3 + $0x44] ss:$16 sps:$4 sm:$0xff]   ;;  %v1604_v9 = vld [vmem:[#allocation3 + $0x4c] ss:$16 sps:$4 sm:$0xff]   ;;  %v1606_v10 = vld [vmem:[#allocation3 + $0x40] ss:$16 sps:$4 sm:$0xff]  }
  0x16   :  { %v1607_v11 = vld [vmem:[#allocation3 + $0x48] ss:$16 sps:$4 sm:$0xff]   ;;  %v1608_v12 = vld [vmem:[#allocation3 + $0x64] ss:$16 sps:$4 sm:$0xff]   ;;  %v1610_v13 = vld [vmem:[#allocation3 + $0x6c] ss:$16 sps:$4 sm:$0xff]  }
  0x17   :  { %v1612_v14 = vld [vmem:[#allocation3 + $0x60] ss:$16 sps:$4 sm:$0xff]   ;;  %v1613_v15 = vld [vmem:[#allocation3 + $0x68] ss:$16 sps:$4 sm:$0xff]   ;;  %v1614_v16 = vld [vmem:[#allocation3 + $0x84] ss:$16 sps:$4 sm:$0xff]  }
  0x18   :  { %856 = vmatpush1.bf16.msra.mxu0 %v1600_v6  ;;  %938 = vmatpush1.bf16.msra.mxu1 %v1601_v7  ;;  %v1616_v17 = vld [vmem:[#allocation3 + $0x8c] ss:$16 sps:$4 sm:$0xff]   ;;  %v1618_v18 = vld [vmem:[#allocation3 + $0x80] ss:$16 sps:$4 sm:$0xff]   ;;  %v1619_v19 = vld [vmem:[#allocation3 + $0x88] ss:$16 sps:$4 sm:$0xff]  }
  0x19   :  { %857 = vmatprep.subr.bf16.mxu0 %v1602_v8  ;;  %939 = vmatprep.subr.bf16.mxu1 %v1604_v9  ;;  %v1620_v20 = vld [vmem:[#allocation3 + $0xa4] ss:$16 sps:$4 sm:$0xff]   ;;  %v1622_v21 = vld [vmem:[#allocation3 + $0xac] ss:$16 sps:$4 sm:$0xff]   ;;  %v1624_v22 = vld [vmem:[#allocation3 + $0xa0] ss:$16 sps:$4 sm:$0xff]  }
  0x1a   :  { %v1625_v23 = vld [vmem:[#allocation3 + $0xa8] ss:$16 sps:$4 sm:$0xff]   ;;  %v1626_v24 = vld [vmem:[#allocation3 + $0xc4] ss:$16 sps:$4 sm:$0xff]   ;;  %v1628_v25 = vld [vmem:[#allocation3 + $0xcc] ss:$16 sps:$4 sm:$0xff]  }
  0x1b   :  { %v1630_v26 = vld [vmem:[#allocation3 + $0xc0] ss:$16 sps:$4 sm:$0xff]   ;;  %v1631_v27 = vld [vmem:[#allocation3 + $0xc8] ss:$16 sps:$4 sm:$0xff]   ;;  %v1632_v28 = vld [vmem:[#allocation3 + $0xe4] ss:$16 sps:$4 sm:$0xff]  }
  0x1c   :  { %858 = vmatpush1.bf16.msra.mxu0 %v1606_v10  ;;  %940 = vmatpush1.bf16.msra.mxu1 %v1607_v11  ;;  %v1634_v29 = vld [vmem:[#allocation3 + $0xec] ss:$16 sps:$4 sm:$0xff]   ;;  %v1636_v30 = vld [vmem:[#allocation3 + $0xe0] ss:$16 sps:$4 sm:$0xff]   ;;  %v1637_v31 = vld [vmem:[#allocation3 + $0xe8] ss:$16 sps:$4 sm:$0xff]  }
  0x1d   :  { %859 = vmatprep.subr.bf16.mxu0 %v1608_v12  ;;  %941 = vmatprep.subr.bf16.mxu1 %v1610_v13  ;;  %v1638_v32 = vld [vmem:[#allocation3 + $0x104] ss:$16 sps:$4 sm:$0xff]   ;;  %v1640_v33 = vld [vmem:[#allocation3 + $0x10c] ss:$16 sps:$4 sm:$0xff]   ;;  %v1642_v34 = vld [vmem:[#allocation3 + $0x100] ss:$16 sps:$4 sm:$0xff]  }
  0x1e   :  { %v1643_v35 = vld [vmem:[#allocation3 + $0x108] ss:$16 sps:$4 sm:$0xff]   ;;  %v1842_v36 = vmov 1983009808   ;;  %v1644_v39 = vld [vmem:[#allocation3 + $0x124] ss:$16 sps:$4 sm:$0xff]  }
  0x1f   :  { %v40_v37 = vunpack.c.l.s4 %v1842_v36  ;;  %v1646_v40 = vld [vmem:[#allocation3 + $0x12c] ss:$16 sps:$4 sm:$0xff]   ;;  %v1648_v41 = vld [vmem:[#allocation3 + $0x120] ss:$16 sps:$4 sm:$0xff]   ;;  %v1885_v43 = vshrl.u32 %v42_v38, 7  ;;  %vm1363_vm0 = vcmask 1024  }
  0x20   :  { %860 = vmatpush1.bf16.msra.mxu0 %v1612_v14  ;;  %942 = vmatpush1.bf16.msra.mxu1 %v1613_v15  ;;  %v1649_v44 = vld [vmem:[#allocation3 + $0x128] ss:$16 sps:$4 sm:$0xff]   ;;  %v1650_v45 = vld [vmem:[#allocation3 + $0x144] ss:$16 sps:$4 sm:$0xff]   ;;  %v1652_v46 = vld [vmem:[#allocation3 + $0x14c] ss:$16 sps:$4 sm:$0xff]  }
  0x21   :  { %861 = vmatprep.subr.bf16.mxu0 %v1614_v16  ;;  %943 = vmatprep.subr.bf16.mxu1 %v1616_v17  ;;  %v41_v42 = vunpack.c.0.s8 %v40_v37  ;;  %v1654_v47 = vld [vmem:[#allocation3 + $0x140] ss:$16 sps:$4 sm:$0xff]   ;;  %v1655_v48 = vld [vmem:[#allocation3 + $0x148] ss:$16 sps:$4 sm:$0xff]   ;;  %v1656_v50 = vld [vmem:[#allocation3 + $0x164] ss:$16 sps:$4 sm:$0xff]  }
  0x22   :  { %v1658_v51 = vld [vmem:[#allocation3 + $0x16c] ss:$16 sps:$4 sm:$0xff]   ;;  %v36_v52 = vld [vmem:[%s2006_s0] sm:$0xff]  ;;  %v1661_v55 = vld [vmem:[#allocation3 + $0x168] ss:$16 sps:$4 sm:$0xff]  }
  0x23   :  { %v44_v49 = vsub.s32 %v41_v42, %v1885_v43  ;;  %v1660_v53 = vld [vmem:[#allocation3 + $0x160] ss:$16 sps:$4 sm:$0xff]   ;;  %v1662_v56 = vld [vmem:[#allocation3 + $0x184] ss:$16 sps:$4 sm:$0xff]   ;;  %v1664_v57 = vld [vmem:[#allocation3 + $0x18c] ss:$16 sps:$4 sm:$0xff]   ;;  %v38_v4 = vcombine.high %v36_v52, %v36_v52 }
  0x24   :  { %862 = vmatpush1.bf16.msra.mxu0 %v1618_v18  ;;  %944 = vmatpush1.bf16.msra.mxu1 %v1619_v19  ;;  %v1666_v59 = vld [vmem:[#allocation3 + $0x180] ss:$16 sps:$4 sm:$0xff]   ;;  %v1667_v61 = vld [vmem:[#allocation3 + $0x188] ss:$16 sps:$4 sm:$0xff]   ;;  %v1668_v62 = vld [vmem:[#allocation3 + $0x1a4] ss:$16 sps:$4 sm:$0xff]  }
  0x25   :  { %863 = vmatprep.subr.bf16.mxu0 %v1620_v20  ;;  %945 = vmatprep.subr.bf16.mxu1 %v1622_v21  ;;  %v45_v54 = vrot.slane %v36_v52, %v44_v49  ;;  %v1670_v63 = vld [vmem:[#allocation3 + $0x1ac] ss:$16 sps:$4 sm:$0xff]   ;;  %v1672_v0 = vld [vmem:[#allocation3 + $0x1a0] ss:$16 sps:$4 sm:$0xff]   ;;  %v1673_v1 = vld [vmem:[#allocation3 + $0x1a8] ss:$16 sps:$4 sm:$0xff]   ;;  %v1891_v9 = vrot.slane %v38_v4, %v44_v49 }
  0x26   :  { %v1674_v2 = vld [vmem:[#allocation3 + $0x1c4] ss:$16 sps:$4 sm:$0xff]   ;;  %v1676_v3 = vld [vmem:[#allocation3 + $0x1cc] ss:$16 sps:$4 sm:$0xff]   ;;  %v1678_v5 = vld [vmem:[#allocation3 + $0x1c0] ss:$16 sps:$4 sm:$0xff]  }
  0x27   :  { %v53_v58 = vcombine.high %v45_v54, %v45_v54  ;;  %v1679_v6 = vld [vmem:[#allocation3 + $0x1c8] ss:$16 sps:$4 sm:$0xff]   ;;  %v1680_v7 = vld [vmem:[#allocation3 + $0x1e4] ss:$16 sps:$4 sm:$0xff]   ;;  %v1682_v8 = vld [vmem:[#allocation3 + $0x1ec] ss:$16 sps:$4 sm:$0xff]   ;;  %v54_v14 = vcombine.high %v1891_v9, %v1891_v9  ;;  %v59_v16 = vpack.c.bf16 %v45_v54, %v45_v54 }
  0x28   :  { %864 = vmatpush1.bf16.msra.mxu0 %v1624_v22  ;;  %946 = vmatpush1.bf16.msra.mxu1 %v1625_v23  ;;  %v1684_v10 = vld [vmem:[#allocation3 + $0x1e0] ss:$16 sps:$4 sm:$0xff]   ;;  %v1685_v11 = vld [vmem:[#allocation3 + $0x1e8] ss:$16 sps:$4 sm:$0xff]   ;;  %v1689_v12 = vld [vmem:[#allocation3 + $0x204] ss:$16 sps:$4 sm:$0xff]  }
  0x29   :  { %865 = vmatprep.subr.bf16.mxu0 %v1626_v24  ;;  %947 = vmatprep.subr.bf16.mxu1 %v1628_v25  ;;  %v60_v60 = vpack.c.bf16 %v53_v58, %v53_v58  ;;  %v1692_v13 = vld [vmem:[#allocation3 + $0x20c] ss:$16 sps:$4 sm:$0xff]   ;;  %v1687_v15 = vld [vmem:[#allocation3 + $0x200] ss:$16 sps:$4 sm:$0xff]   ;;  %v1690_v17 = vld [vmem:[#allocation3 + $0x208] ss:$16 sps:$4 sm:$0xff]   ;;  %v62_v20 = vpack.c.bf16 %v54_v14, %v54_v14 }
  0x2a   :  { %v1695_v18 = vld [vmem:[#allocation3 + $0x224] ss:$16 sps:$4 sm:$0xff]   ;;  %v1698_v19 = vld [vmem:[#allocation3 + $0x22c] ss:$16 sps:$4 sm:$0xff]   ;;  %v1693_v21 = vld [vmem:[#allocation3 + $0x220] ss:$16 sps:$4 sm:$0xff]  }
  0x2b   :  { %885 = vmatprep.mubr.bf16.mxu0 %v60_v60  ;;  %967 = vmatprep.mubr.bf16.mxu1 %v60_v60  ;;  %v1696_v22 = vld [vmem:[#allocation3 + $0x228] ss:$16 sps:$4 sm:$0xff]   ;;  %v1701_v23 = vld [vmem:[#allocation3 + $0x244] ss:$16 sps:$4 sm:$0xff]   ;;  %v1704_v24 = vld [vmem:[#allocation3 + $0x24c] ss:$16 sps:$4 sm:$0xff]  }
  0x2c   :  { %866 = vmatpush1.bf16.msra.mxu0 %v1630_v26  ;;  %948 = vmatpush1.bf16.msra.mxu1 %v1631_v27  ;;  %v1699_v25 = vld [vmem:[#allocation3 + $0x240] ss:$16 sps:$4 sm:$0xff]   ;;  %v1702_v26 = vld [vmem:[#allocation3 + $0x248] ss:$16 sps:$4 sm:$0xff]   ;;  %v1707_v27 = vld [vmem:[#allocation3 + $0x264] ss:$16 sps:$4 sm:$0xff]  }
  0x2d   :  { %867 = vmatprep.subr.bf16.mxu0 %v1632_v28  ;;  %949 = vmatprep.subr.bf16.mxu1 %v1634_v29  ;;  %v1710_v28 = vld [vmem:[#allocation3 + $0x26c] ss:$16 sps:$4 sm:$0xff]   ;;  %v1705_v29 = vld [vmem:[#allocation3 + $0x260] ss:$16 sps:$4 sm:$0xff]   ;;  %v1720_v38 = vld [vmem:[#allocation3 + $0x2a8] ss:$16 sps:$4 sm:$0xff]  }
  0x2e   :  { %v1722_v36 = vld [vmem:[#allocation3 + $0x2ac] ss:$16 sps:$4 sm:$0xff]   ;;  %v1717_v37 = vld [vmem:[#allocation3 + $0x2a0] ss:$16 sps:$4 sm:$0xff]   ;;  %v1726_v42 = vld [vmem:[#allocation3 + $0x2c8] ss:$16 sps:$4 sm:$0xff]  }
  0x2f   :  { %v1740_v49 = vld [vmem:[#allocation3 + $0x30c] ss:$16 sps:$4 sm:$0xff]   ;;  %v1743_v52 = vld [vmem:[#allocation3 + $0x324] ss:$16 sps:$4 sm:$0xff]   ;;  %v1741_v54 = vld [vmem:[#allocation3 + $0x320] ss:$16 sps:$4 sm:$0xff]  }
  0x30   :  { %868 = vmatpush1.bf16.msra.mxu0 %v1636_v30  ;;  %950 = vmatpush1.bf16.msra.mxu1 %v1637_v31  ;;  %v1708_v30 = vld [vmem:[#allocation3 + $0x268] ss:$16 sps:$4 sm:$0xff]   ;;  %v1713_v31 = vld [vmem:[#allocation3 + $0x284] ss:$16 sps:$4 sm:$0xff]   ;;  %v1747_v58 = vld [vmem:[#allocation3 + $0x340] ss:$16 sps:$4 sm:$0xff]  }
  0x31   :  { %869 = vmatprep.subr.bf16.mxu0 %v1638_v32  ;;  %951 = vmatprep.subr.bf16.mxu1 %v1640_v33  ;;  %v1716_v32 = vld [vmem:[#allocation3 + $0x28c] ss:$16 sps:$4 sm:$0xff]   ;;  %v1711_v33 = vld [vmem:[#allocation3 + $0x280] ss:$16 sps:$4 sm:$0xff]   ;;  %v1755_v60 = vld [vmem:[#allocation3 + $0x364] ss:$16 sps:$4 sm:$0xff]  }
  0x32   :  { %v1767_v4 = vld [vmem:[#allocation3 + $0x3a4] ss:$16 sps:$4 sm:$0xff]   ;;  %v1782_v14 = vld [vmem:[#allocation3 + $0x3ec] ss:$16 sps:$4 sm:$0xff]  }
  0x34   :  { %870 = vmatpush1.bf16.msra.mxu0 %v1642_v34  ;;  %952 = vmatpush1.bf16.msra.mxu1 %v1643_v35  ;;  %v1714_v34 = vld [vmem:[#allocation3 + $0x288] ss:$16 sps:$4 sm:$0xff]   ;;  %v1719_v35 = vld [vmem:[#allocation3 + $0x2a4] ss:$16 sps:$4 sm:$0xff]  }
  0x35   :  { %871 = vmatprep.subr.bf16.mxu0 %v1644_v39  ;;  %953 = vmatprep.subr.bf16.mxu1 %v1646_v40  ;;  %v1725_v39 = vld [vmem:[#allocation3 + $0x2c4] ss:$16 sps:$4 sm:$0xff]   ;;  %v1728_v40 = vld [vmem:[#allocation3 + $0x2cc] ss:$16 sps:$4 sm:$0xff]  }
  0x38   :  { %872 = vmatpush1.bf16.msra.mxu0 %v1648_v41  ;;  %954 = vmatpush1.bf16.msra.mxu1 %v1649_v44  ;;  %v1723_v41 = vld [vmem:[#allocation3 + $0x2c0] ss:$16 sps:$4 sm:$0xff]   ;;  %v1731_v44 = vld [vmem:[#allocation3 + $0x2e4] ss:$16 sps:$4 sm:$0xff]  }
  0x39   :  { %873 = vmatprep.subr.bf16.mxu0 %v1650_v45  ;;  %955 = vmatprep.subr.bf16.mxu1 %v1652_v46  ;;  %v1734_v45 = vld [vmem:[#allocation3 + $0x2ec] ss:$16 sps:$4 sm:$0xff]   ;;  %v1729_v46 = vld [vmem:[#allocation3 + $0x2e0] ss:$16 sps:$4 sm:$0xff]  }
  0x3c   :  { %874 = vmatpush1.bf16.msra.mxu0 %v1654_v47  ;;  %956 = vmatpush1.bf16.msra.mxu1 %v1655_v48  ;;  %v1732_v47 = vld [vmem:[#allocation3 + $0x2e8] ss:$16 sps:$4 sm:$0xff]   ;;  %v1737_v48 = vld [vmem:[#allocation3 + $0x304] ss:$16 sps:$4 sm:$0xff]  }
  0x3d   :  { %875 = vmatprep.subr.bf16.mxu0 %v1656_v50  ;;  %957 = vmatprep.subr.bf16.mxu1 %v1658_v51  ;;  %v1735_v50 = vld [vmem:[#allocation3 + $0x300] ss:$16 sps:$4 sm:$0xff]   ;;  %v1738_v51 = vld [vmem:[#allocation3 + $0x308] ss:$16 sps:$4 sm:$0xff]  }
  0x40   :  { %876 = vmatpush1.bf16.msra.mxu0 %v1660_v53  ;;  %958 = vmatpush1.bf16.msra.mxu1 %v1661_v55  ;;  %v1746_v53 = vld [vmem:[#allocation3 + $0x32c] ss:$16 sps:$4 sm:$0xff]   ;;  %v1744_v55 = vld [vmem:[#allocation3 + $0x328] ss:$16 sps:$4 sm:$0xff]  }
  0x41   :  { %877 = vmatprep.subr.bf16.mxu0 %v1662_v56  ;;  %959 = vmatprep.subr.bf16.mxu1 %v1664_v57  ;;  %v1749_v56 = vld [vmem:[#allocation3 + $0x344] ss:$16 sps:$4 sm:$0xff]   ;;  %v1752_v57 = vld [vmem:[#allocation3 + $0x34c] ss:$16 sps:$4 sm:$0xff]  }
  0x44   :  { %878 = vmatpush1.bf16.msra.mxu0 %v1666_v59  ;;  %960 = vmatpush1.bf16.msra.mxu1 %v1667_v61  ;;  %v1750_v59 = vld [vmem:[#allocation3 + $0x348] ss:$16 sps:$4 sm:$0xff]   ;;  %v1758_v61 = vld [vmem:[#allocation3 + $0x36c] ss:$16 sps:$4 sm:$0xff]  }
  0x45   :  { %879 = vmatprep.subr.bf16.mxu0 %v1668_v62  ;;  %961 = vmatprep.subr.bf16.mxu1 %v1670_v63  ;;  %v1753_v62 = vld [vmem:[#allocation3 + $0x360] ss:$16 sps:$4 sm:$0xff]   ;;  %v1756_v63 = vld [vmem:[#allocation3 + $0x368] ss:$16 sps:$4 sm:$0xff]  }
  0x48   :  { %880 = vmatpush1.bf16.msra.mxu0 %v1672_v0  ;;  %962 = vmatpush1.bf16.msra.mxu1 %v1673_v1  ;;  %v1761_v0 = vld [vmem:[#allocation3 + $0x384] ss:$16 sps:$4 sm:$0xff]   ;;  %v1764_v1 = vld [vmem:[#allocation3 + $0x38c] ss:$16 sps:$4 sm:$0xff]  }
  0x49   :  { %881 = vmatprep.subr.bf16.mxu0 %v1674_v2  ;;  %963 = vmatprep.subr.bf16.mxu1 %v1676_v3  ;;  %v1759_v2 = vld [vmem:[#allocation3 + $0x380] ss:$16 sps:$4 sm:$0xff]   ;;  %v1762_v3 = vld [vmem:[#allocation3 + $0x388] ss:$16 sps:$4 sm:$0xff]  }
  0x4c   :  { %882 = vmatpush1.bf16.msra.mxu0 %v1678_v5  ;;  %964 = vmatpush1.bf16.msra.mxu1 %v1679_v6  ;;  %v1770_v5 = vld [vmem:[#allocation3 + $0x3ac] ss:$16 sps:$4 sm:$0xff]   ;;  %v1765_v6 = vld [vmem:[#allocation3 + $0x3a0] ss:$16 sps:$4 sm:$0xff]  }
  0x4d   :  { %883 = vmatprep.subr.bf16.mxu0 %v1680_v7  ;;  %965 = vmatprep.subr.bf16.mxu1 %v1682_v8  ;;  %v1768_v7 = vld [vmem:[#allocation3 + $0x3a8] ss:$16 sps:$4 sm:$0xff]   ;;  %v1773_v8 = vld [vmem:[#allocation3 + $0x3c4] ss:$16 sps:$4 sm:$0xff]  }
  0x50   :  { %884 = vmatpush1.bf16.msra.mxu0 %v1684_v10  ;;  %966 = vmatpush1.bf16.msra.mxu1 %v1685_v11  ;;  %v1776_v10 = vld [vmem:[#allocation3 + $0x3cc] ss:$16 sps:$4 sm:$0xff]   ;;  %v1771_v11 = vld [vmem:[#allocation3 + $0x3c0] ss:$16 sps:$4 sm:$0xff]  }
  0x51   :  { %894 = vmatprep.subr.bf16.mxu0 %v1689_v12  ;;  %976 = vmatprep.subr.bf16.mxu1 %v1692_v13  ;;  %v1774_v12 = vld [vmem:[#allocation3 + $0x3c8] ss:$16 sps:$4 sm:$0xff]   ;;  %v1779_v13 = vld [vmem:[#allocation3 + $0x3e4] ss:$16 sps:$4 sm:$0xff]  }
  0x53   :  { %886 = vmatmul.mubr.bf16.vlgmr.msra.gmra.mrb[0].mxu0 %v59_v16  ;;  %968 = vmatmul.mubr.bf16.vlgmr.msra.gmra.mrb[0].mxu1 %v59_v16  ;;  %v1780_v16 = vld [vmem:[#allocation3 + $0x3e8] ss:$16 sps:$4 sm:$0xff]  }
  0x54   :  { %895 = vmatpush1.bf16.msra.mxu0 %v1687_v15  ;;  %977 = vmatpush1.bf16.msra.mxu1 %v1690_v17  ;;  %v1777_v15 = vld [vmem:[#allocation3 + $0x3e0] ss:$16 sps:$4 sm:$0xff]  }
  0x55   :  { %896 = vmatprep.subr.bf16.mxu0 %v1695_v18  ;;  %978 = vmatprep.subr.bf16.mxu1 %v1698_v19  ;;  %v1783_v17 = vld [vmem:[%s2009_s3 + $0x40] sm:$0xff]   ;;  %v61_v19 = vpack.c.bf16 %v1891_v9, %v1891_v9  ;;  %v1788_v9 = vld [vmem:[%s2009_s3 + $0xc8] sm:$0xff]  }
  0x56   :  { %926 = vmatprep.mubr.bf16.mxu0 %v62_v20  ;;  %1008 = vmatprep.mubr.bf16.mxu1 %v62_v20  ;;  %v1784_v18 = vld [vmem:[%s2009_s3 + $0xc0] sm:$0xff]  }
  0x57   :  { %v1785_v20 = vld [vmem:[%s2009_s3] sm:$0xff]  }
  0x58   :  { %897 = vmatpush1.bf16.msra.mxu0 %v1693_v21  ;;  %979 = vmatpush1.bf16.msra.mxu1 %v1696_v22  ;;  %v1786_v21 = vld [vmem:[%s2009_s3 + $0x80] sm:$0xff]   ;;  %v1787_v22 = vld [vmem:[%s2009_s3 + $0x48] sm:$0xff]  }
  0x59   :  { %898 = vmatprep.subr.bf16.mxu0 %v1701_v23  ;;  %980 = vmatprep.subr.bf16.mxu1 %v1704_v24  ;;  %v1789_v23 = vld [vmem:[%s2009_s3 + $0x8] sm:$0xff]  }
  0x5a   :  { %v1790_v24 = vld [vmem:[%s2009_s3 + $0x88] sm:$0xff]  }
  0x5c   :  { %899 = vmatpush1.bf16.msra.mxu0 %v1699_v25  ;;  %981 = vmatpush1.bf16.msra.mxu1 %v1702_v26  ;;  %v1791_v25 = vld [vmem:[%s2009_s3 + $0x50] sm:$0xff]  }
  0x5d   :  { %900 = vmatprep.subr.bf16.mxu0 %v1707_v27  ;;  %982 = vmatprep.subr.bf16.mxu1 %v1710_v28  ;;  %v1792_v26 = vld [vmem:[%s2009_s3 + $0xd0] sm:$0xff]  }
  0x5e   :  { %v1793_v27 = vld [vmem:[%s2009_s3 + $0x10] sm:$0xff]  }
  0x5f   :  { %v1794_v28 = vld [vmem:[%s2009_s3 + $0x90] sm:$0xff]  }
  0x60   :  { %901 = vmatpush1.bf16.msra.mxu0 %v1705_v29  ;;  %983 = vmatpush1.bf16.msra.mxu1 %v1708_v30  ;;  %v1795_v29 = vld [vmem:[%s2009_s3 + $0x58] sm:$0xff]  }
  0x61   :  { %902 = vmatprep.subr.bf16.mxu0 %v1713_v31  ;;  %984 = vmatprep.subr.bf16.mxu1 %v1716_v32  ;;  %v1796_v30 = vld [vmem:[%s2009_s3 + $0xd8] sm:$0xff]  }
  0x62   :  { %v1797_v31 = vld [vmem:[%s2009_s3 + $0x18] sm:$0xff]  }
  0x63   :  { %v1798_v32 = vld [vmem:[%s2009_s3 + $0x98] sm:$0xff]  }
  0x64   :  { %903 = vmatpush1.bf16.msra.mxu0 %v1711_v33  ;;  %985 = vmatpush1.bf16.msra.mxu1 %v1714_v34  ;;  %v1799_v33 = vld [vmem:[%s2009_s3 + $0x60] sm:$0xff]  }
  0x65   :  { %904 = vmatprep.subr.bf16.mxu0 %v1719_v35  ;;  %986 = vmatprep.subr.bf16.mxu1 %v1722_v36  ;;  %v1800_v34 = vld [vmem:[%s2009_s3 + $0xe0] sm:$0xff]  }
  0x66   :  { %v1801_v35 = vld [vmem:[%s2009_s3 + $0x20] sm:$0xff]  }
  0x67   :  { %v1802_v36 = vld [vmem:[%s2009_s3 + $0xa0] sm:$0xff]  }
  0x68   :  { %905 = vmatpush1.bf16.msra.mxu0 %v1717_v37  ;;  %987 = vmatpush1.bf16.msra.mxu1 %v1720_v38  ;;  %v1803_v37 = vld [vmem:[%s2009_s3 + $0x68] sm:$0xff]  }
  0x69   :  { %906 = vmatprep.subr.bf16.mxu0 %v1725_v39  ;;  %988 = vmatprep.subr.bf16.mxu1 %v1728_v40  ;;  %v1804_v38 = vld [vmem:[%s2009_s3 + $0xe8] sm:$0xff]  }
  0x6a   :  { %v1805_v39 = vld [vmem:[%s2009_s3 + $0x28] sm:$0xff]  }
  0x6b   :  { %v1806_v40 = vld [vmem:[%s2009_s3 + $0xa8] sm:$0xff]  }
  0x6c   :  { %907 = vmatpush1.bf16.msra.mxu0 %v1723_v41  ;;  %989 = vmatpush1.bf16.msra.mxu1 %v1726_v42  ;;  %v1807_v41 = vld [vmem:[%s2009_s3 + $0x70] sm:$0xff]  }
  0x6d   :  { %908 = vmatprep.subr.bf16.mxu0 %v1731_v44  ;;  %990 = vmatprep.subr.bf16.mxu1 %v1734_v45  ;;  %v1808_v42 = vld [vmem:[%s2009_s3 + $0xf0] sm:$0xff]  }
  0x6e   :  { %v1809_v44 = vld [vmem:[%s2009_s3 + $0x30] sm:$0xff]  }
  0x6f   :  { %v1810_v45 = vld [vmem:[%s2009_s3 + $0xb0] sm:$0xff]  }
  0x70   :  { %909 = vmatpush1.bf16.msra.mxu0 %v1729_v46  ;;  %991 = vmatpush1.bf16.msra.mxu1 %v1732_v47  ;;  %v1811_v46 = vld [vmem:[%s2009_s3 + $0x78] sm:$0xff]  }
  0x71   :  { %910 = vmatprep.subr.bf16.mxu0 %v1737_v48  ;;  %992 = vmatprep.subr.bf16.mxu1 %v1740_v49  ;;  %v1812_v47 = vld [vmem:[%s2009_s3 + $0xf8] sm:$0xff]  }
  0x72   :  { %v1813_v48 = vld [vmem:[%s2009_s3 + $0x38] sm:$0xff]  }
  0x73   :  { %v1814_v49 = vld [vmem:[%s2009_s3 + $0xb8] sm:$0xff]  }
  0x74   :  { %911 = vmatpush1.bf16.msra.mxu0 %v1735_v50  ;;  %993 = vmatpush1.bf16.msra.mxu1 %v1738_v51  ;;  %v195_v50 = vsub.s32 0, %v1885_v43  ;;  %v203_v51 = vsub.s32 2, %v1885_v43 }
  0x75   :  { %912 = vmatprep.subr.bf16.mxu0 %v1743_v52  ;;  %994 = vmatprep.subr.bf16.mxu1 %v1746_v53  ;;  %v191_v52 = vld [vmem:[%s2008_s2] sm:$0xf]  ;;  %v199_v53 = vsub.s32 1, %v1885_v43 }
  0x78   :  { %913 = vmatpush1.bf16.msra.mxu0 %v1741_v54  ;;  %995 = vmatpush1.bf16.msra.mxu1 %v1744_v55  ;;  %v207_v54 = vsub.s32 3, %v1885_v43  ;;  %v196_v55 = vrot.slane %v191_v52, %v195_v50 }
  0x79   :  { %914 = vmatprep.subr.bf16.mxu0 %v1749_v56  ;;  %996 = vmatprep.subr.bf16.mxu1 %v1752_v57  ;;  %v204_v56 = vrot.slane %v191_v52, %v203_v51  ;;  %v200_v57 = vrot.slane %v191_v52, %v199_v53 }
  0x7c   :  { %915 = vmatpush1.bf16.msra.mxu0 %v1747_v58  ;;  %997 = vmatpush1.bf16.msra.mxu1 %v1750_v59  ;;  %v208_v58 = vrot.slane %v191_v52, %v207_v54 }
  0x7d   :  { %916 = vmatprep.subr.bf16.mxu0 %v1755_v60  ;;  %998 = vmatprep.subr.bf16.mxu1 %v1758_v61 }
  0x80   :  { %917 = vmatpush1.bf16.msra.mxu0 %v1753_v62  ;;  %999 = vmatpush1.bf16.msra.mxu1 %v1756_v63 }
  0x81   :  { %918 = vmatprep.subr.bf16.mxu0 %v1761_v0  ;;  %1000 = vmatprep.subr.bf16.mxu1 %v1764_v1 }
  0x84   :  { %919 = vmatpush1.bf16.msra.mxu0 %v1759_v2  ;;  %1001 = vmatpush1.bf16.msra.mxu1 %v1762_v3 }
  0x85   :  { %920 = vmatprep.subr.bf16.mxu0 %v1767_v4  ;;  %1002 = vmatprep.subr.bf16.mxu1 %v1770_v5 }
  0x88   :  { %921 = vmatpush1.bf16.msra.mxu0 %v1765_v6  ;;  %1003 = vmatpush1.bf16.msra.mxu1 %v1768_v7 }
  0x89   :  { %922 = vmatprep.subr.bf16.mxu0 %v1773_v8  ;;  %1004 = vmatprep.subr.bf16.mxu1 %v1776_v10 }
  0x8c   :  { %923 = vmatpush1.bf16.msra.mxu0 %v1771_v11  ;;  %1005 = vmatpush1.bf16.msra.mxu1 %v1774_v12 }
  0x8d   :  { %924 = vmatprep.subr.bf16.mxu0 %v1779_v13  ;;  %1006 = vmatprep.subr.bf16.mxu1 %v1782_v14 }
  0x90   :  { %925 = vmatpush1.bf16.msra.mxu0 %v1777_v15  ;;  %1007 = vmatpush1.bf16.msra.mxu1 %v1780_v16 }
  0x91   :  { %1530 = vmatprep.subr.bf16.mxu0 %v1783_v17  ;;  %1552 = vmatprep.subr.bf16.mxu1 %v1784_v18  ;;  %v1090_v17 = vstv %s2010_s4 }
  0x93   :  { %927 = vmatmul.mubr.bf16.vlgmr.msra.gmra.mrb[0].mxu0 %v61_v19  ;;  %1009 = vmatmul.mubr.bf16.vlgmr.msra.gmra.mrb[0].mxu1 %v61_v19 }
  0x94   :  { %1531 = vmatpush3.bf16.msra.mxu0 %v1785_v20  ;;  %1553 = vmatpush3.bf16.msra.mxu1 %v1786_v21 }
  0x95   :  { %1532 = vmatprep.subr.bf16.mxu0 %v1787_v22  ;;  %1554 = vmatprep.subr.bf16.mxu1 %v1788_v9 }
  0x98   :  { %1533 = vmatpush3.bf16.msra.mxu0 %v1789_v23  ;;  %1555 = vmatpush3.bf16.msra.mxu1 %v1790_v24 }
  0x99   :  { %1534 = vmatprep.subr.bf16.mxu0 %v1791_v25  ;;  %1556 = vmatprep.subr.bf16.mxu1 %v1792_v26 }
  0x9c   :  { %1535 = vmatpush3.bf16.msra.mxu0 %v1793_v27  ;;  %1557 = vmatpush3.bf16.msra.mxu1 %v1794_v28 }
  0x9d   :  { %1536 = vmatprep.subr.bf16.mxu0 %v1795_v29  ;;  %1558 = vmatprep.subr.bf16.mxu1 %v1796_v30 }
  0xa0   :  { %1537 = vmatpush3.bf16.msra.mxu0 %v1797_v31  ;;  %1559 = vmatpush3.bf16.msra.mxu1 %v1798_v32 }
  0xa1   :  { %1538 = vmatprep.subr.bf16.mxu0 %v1799_v33  ;;  %1560 = vmatprep.subr.bf16.mxu1 %v1800_v34 }
  0xa4   :  { %1539 = vmatpush3.bf16.msra.mxu0 %v1801_v35  ;;  %1561 = vmatpush3.bf16.msra.mxu1 %v1802_v36 }
  0xa5   :  { %1540 = vmatprep.subr.bf16.mxu0 %v1803_v37  ;;  %1562 = vmatprep.subr.bf16.mxu1 %v1804_v38 }
  0xa8   :  { %1541 = vmatpush3.bf16.msra.mxu0 %v1805_v39  ;;  %1563 = vmatpush3.bf16.msra.mxu1 %v1806_v40 }
  0xa9   :  { %1542 = vmatprep.subr.bf16.mxu0 %v1807_v41  ;;  %1564 = vmatprep.subr.bf16.mxu1 %v1808_v42 }
  0xac   :  { %1543 = vmatpush3.bf16.msra.mxu0 %v1809_v44  ;;  %1565 = vmatpush3.bf16.msra.mxu1 %v1810_v45 }
  0xad   :  { %1544 = vmatprep.subr.bf16.mxu0 %v1811_v46  ;;  %1566 = vmatprep.subr.bf16.mxu1 %v1812_v47 }
  0xb0   :  { %1545 = vmatpush3.bf16.msra.mxu0 %v1813_v48  ;;  %1567 = vmatpush3.bf16.msra.mxu1 %v1814_v49 }
 0x166   :  { %v928_v59 = vpop.f32.mrb[0].mxu0  ;;  %v1010_v60 = vpop.f32.mrb[0].mxu1 }
 0x167   :  { %v1574_v61 = vadd.f32 %v928_v59, %v196_v55  ;;  %v1576_v62 = vadd.f32 %v1010_v60, %v204_v56  ;;  %v930_v63 = vpop.f32.mrb[1].mxu0  ;;  %v1012_v0 = vpop.f32.mrb[1].mxu1 }
 0x168   :  { %v1575_v1 = vadd.f32 %v930_v63, %v200_v57  ;;  %v1577_v2 = vadd.f32 %v1012_v0, %v208_v58  ;;  %v932_v3 = vpop.f32.mrb[2].mxu0  ;;  %v1014_v4 = vpop.f32.mrb[2].mxu1 }
 0x169   :  { %v1017_v5 = vmax.f32 %v1574_v61, 0.0  ;;  %v1019_v6 = vmax.f32 %v1576_v62, 0.0  ;;  %v933_v7 = vpop.f32.mrb[3].mxu0  ;;  %v1015_v8 = vpop.f32.mrb[3].mxu1 }
 0x16a   :  { %v1018_v10 = vmax.f32 %v1575_v1, 0.0  ;;  %v1020_v43 = vmax.f32 %v1577_v2, 0.0 }
 0x16b   :  { %v1021_v13 = vpack.c.bf16 %v1017_v5, %v1017_v5  ;;  %v1023_v14 = vpack.c.bf16 %v1019_v6, %v1019_v6 }
 0x16c   :  { %v1022_v11 = vpack.c.bf16 %v1018_v10, %v1018_v10  ;;  %v1024_v12 = vpack.c.bf16 %v1020_v43, %v1020_v43 }
 0x16e   :  { %1315 = vmatprep.mubr.bf16.mxu0 %v1022_v11  ;;  %1355 = vmatprep.mubr.bf16.mxu1 %v1024_v12 }
 0x16f   :  { %1316 = vmatmul.mubr.bf16.vlgmr.msra.gmra.mrb[4].mxu0 %v1021_v13  ;;  %1356 = vmatmul.mubr.bf16.vlgmr.msra.gmra.mrb[4].mxu1 %v1023_v14 }
 0x242   :  { %v1546_v15 = vpop.f32.mrb[4].mxu0  ;;  %v1568_v16 = vpop.f32.mrb[4].mxu1 }
 0x243   :  { %v1547_v18 = vpop.f32.mrb[5].mxu0  ;;  %v1569_v19 = vpop.f32.mrb[5].mxu1 }
 0x244   :  { %v1548_v20 = vadd.f32 %v1547_v18, %v1546_v15  ;;  %v1570_v21 = vadd.f32 %v1569_v19, %v1568_v16  ;;  %v1549_v22 = vpop.f32.mrb[6].mxu0  ;;  %v1571_v9 = vpop.f32.mrb[6].mxu1 }
 0x245   :  { %v1550_v23 = vpop.f32.mrb[7].mxu0  ;;  %v1572_v24 = vpop.f32.mrb[7].mxu1 }
 0x246   :  { %v1318_v25 = vadd.f32 %v1548_v20, %v1090_v17 }
 0x248   :  { %v1358_v26 = vadd.f32 %v1570_v21, %v1318_v25 }
 0x24a   :  { %1364 = vst.msk [vmem:[%s2011_s5] sm:$0x3] %vm1363_vm0, %v1358_v26 }
 0x24b   :  { %1369 = vsyncpa [#allocation4], 1 }

</bundles_post_ra>
